<compile_context>
chip_gen: v7x
topology: tpu7x:2x2x1
jax: 0.10.0
libtpu: 0.0.40
codegen_flags: <defaults>
</compile_context>

<pallas_src>
import math

import jax
import jax.numpy as jnp
from jax.experimental import pallas as pl
from jax.experimental.pallas import tpu as pltpu


def _round_up(x, m):
    return (x + m - 1) // m * m


def _make_dismax_kernel(num_classes, c_pad):
    """Kernel factory closing over static class counts."""
    inv_c = 1.0 / float(num_classes)

    def kernel(factor_ref, feat_ref, protoT_ref, out_ref):
        # feat_ref:   [TILE_B, F_pad]   (input dtype)
        # protoT_ref: [F_pad, C_pad]    pre-normalized, pre-transposed, resident
        feat = feat_ref[...].astype(jnp.float32)

        # Row-wise L2 normalize via rsqrt (EUP). Matches F.normalize(eps=1e-12)
        # to fp32 precision; zero-padded rows/columns stay exactly zero.
        inv_norm = jax.lax.rsqrt(
            jnp.sum(feat * feat, axis=1, keepdims=True) + 1e-24)
        feat_n = (feat * inv_norm).astype(protoT_ref.dtype)

        # Single MXU matmul; no in-kernel transpose (prototypes are [F, C]).
        cos = jnp.dot(feat_n, protoT_ref[...],
                      preferred_element_type=jnp.float32)      # [TILE_B, C_pad]

        # cdist(p=2)/sqrt(2) for unit vectors.
        dist = jnp.sqrt(jnp.maximum(1.0 - cos, 0.0))

        # Row mean over the *real* classes only (padded columns masked out).
        if num_classes == c_pad:
            row_sum = jnp.sum(dist, axis=1, keepdims=True)
        else:
            col = jax.lax.broadcasted_iota(jnp.int32, dist.shape, 1)
            row_sum = jnp.sum(jnp.where(col < num_classes, dist, 0.0),
                              axis=1, keepdims=True)
        mean = row_sum * inv_c

        # factor = -|distance_scale| / temperature, folded into one scalar mul:
        #   -(|s|*d + mean(|s|*d)) / T == factor * (d + mean(d))
        out_ref[...] = (factor_ref[0] * (dist + mean)).astype(out_ref.dtype)

    return kernel


def dismax_forward(features, prototypes, distance_scale, temperature,
                   *, tile_b=None, matmul_dtype=None):
    B, F = features.shape
    C, F2 = prototypes.shape
    assert F == F2

    f_pad = _round_up(F, 128)
    c_pad = _round_up(C, 128)
    if tile_b is None:
        tile_b = min(512, _round_up(B, 8))
    b_pad = _round_up(B, tile_b)
    if matmul_dtype is None:
        matmul_dtype = features.dtype

    # One-time wrapper-side prep (plain XLA): prototype normalization,
    # zero-padding to lane-dense shapes, pre-transpose to [F, C].
    proto_f32 = prototypes.astype(jnp.float32)
    p_norm = jnp.sqrt(jnp.sum(proto_f32 * proto_f32, axis=1, keepdims=True))
    proto_n = proto_f32 / jnp.maximum(p_norm, 1e-12)
    proto_t = jnp.zeros((f_pad, c_pad), matmul_dtype)
    proto_t = proto_t.at[:F, :C].set(proto_n.T.astype(matmul_dtype))

    feat_p = jnp.zeros((b_pad, f_pad), features.dtype).at[:B, :F].set(features)

    # Fused scalar factor (SMEM input).
    factor = (-jnp.abs(distance_scale) / temperature).astype(jnp.float32)

    grid = (b_pad // tile_b,)

    # VMEM estimate: double-buffered feature tiles + resident prototypes +
    # double-buffered output tiles; only raise the scoped limit when needed.
    itm = jnp.dtype(matmul_dtype).itemsize
    est = (2 * tile_b * f_pad * 4
           + 2 * f_pad * c_pad * itm
           + 2 * tile_b * c_pad * 4
           + (2 << 20))
    cp_kwargs = dict(dimension_semantics=("parallel",))
    if est > (30 << 20):
        cp_kwargs["vmem_limit_bytes"] = int(min(max(est, 32 << 20), 96 << 20))

    out_padded = pl.pallas_call(
        _make_dismax_kernel(C, c_pad),
        out_shape=jax.ShapeDtypeStruct((b_pad, c_pad), jnp.float32),
        grid=grid,
        in_specs=[
            pl.BlockSpec(memory_space=pltpu.SMEM),              # factor (1,)
            pl.BlockSpec((tile_b, f_pad), lambda i: (i, 0)),    # feature tiles
            pl.BlockSpec((f_pad, c_pad), lambda i: (0, 0)),     # resident protos
        ],
        out_specs=pl.BlockSpec((tile_b, c_pad), lambda i: (i, 0)),
        compiler_params=pltpu.CompilerParams(**cp_kwargs),
    )(factor, feat_p, proto_t)

    return out_padded[:B, :C]


def dismax_reference(features, prototypes, distance_scale, temperature):
    """Pure-JAX reference mirroring the PyTorch forward (explicit cdist)."""
    fn = features / jnp.maximum(
        jnp.linalg.norm(features, axis=1, keepdims=True), 1e-12)
    pn = prototypes / jnp.maximum(
        jnp.linalg.norm(prototypes, axis=1, keepdims=True), 1e-12)
    diff = fn[:, None, :] - pn[None, :, :]
    d = jnp.sqrt(jnp.sum(diff * diff, axis=-1)) / math.sqrt(2.0)
    iso = jnp.abs(distance_scale[0]) * d
    logits = -(iso + jnp.mean(iso, axis=1, keepdims=True))
    return logits / temperature[0]


if __name__ == "__main__":
    num_features = 32
    num_classes = 10
    batch = 8

    key = jax.random.PRNGKey(0)
    k_feat, k_proto = jax.random.split(key)

    # Deterministic "parameters" matching the module's __init__:
    #   distance_scale := 1.0, prototypes ~ N(0, 1), temperature := 1.0
    features = jax.random.normal(k_feat, (batch, num_features), jnp.float32)
    prototypes = jax.random.normal(k_proto, (num_classes, num_features),
                                   jnp.float32)
    distance_scale = jnp.ones((1,), jnp.float32)
    temperature = jnp.ones((1,), jnp.float32)
    # (precomputed_thresholds / validationset_available / score_type are unused
    #  in the forward pass.)

    out = dismax_forward(features, prototypes, distance_scale, temperature)
    out = jax.block_until_ready(out)

    ref = dismax_reference(features, prototypes, distance_scale, temperature)
    assert out.shape == (batch, num_classes)
    assert jnp.allclose(out, ref, atol=2e-5, rtol=2e-5)

    print("KERNEL_OK")
</pallas_src>

<mosaic_0001>
module attributes {stable_mosaic.version = 11 : i64} {
  func.func @kernel(%arg0: i32, %arg1: memref<1xf32, #tpu.memory_space<smem>>, %arg2: memref<8x128xf32, #tpu.memory_space<vmem>>, %arg3: memref<128x128xf32, #tpu.memory_space<vmem>>, %arg4: memref<8x128xf32, #tpu.memory_space<vmem>>) attributes {dimension_semantics = [#tpu.dimension_semantics<parallel>], iteration_bounds = array<i64: 1>, scalar_prefetch = 0 : i64, scratch_operands = 0 : i64, tpu.core_type = #tpu.core_type<tc>, window_params = [{transform_indices = @transform_0, window_bounds = array<i64: 1>}, {transform_indices = @transform_1, window_bounds = array<i64: 8, 128>}, {pipeline_mode = #tpu.pipeline_mode<synchronous>, transform_indices = @transform_2, window_bounds = array<i64: 128, 128>}, {transform_indices = @transform_3, window_bounds = array<i64: 8, 128>}]} {
    %c0 = arith.constant 0 : index
    %c0_0 = arith.constant 0 : index
    %0 = vector.load %arg2[%c0, %c0_0] : memref<8x128xf32, #tpu.memory_space<vmem>>, vector<8x128xf32>
    %1 = arith.mulf %0, %0 : vector<8x128xf32>
    %cst = arith.constant dense<0.000000e+00> : vector<8xf32>
    %2 = vector.multi_reduction <add>, %1, %cst [1] : vector<8x128xf32> to vector<8xf32>
    %3 = vector.shape_cast %2 : vector<8xf32> to vector<8x1xf32>
    %cst_1 = arith.constant 1.000000e-24 : f32
    %4 = vector.broadcast %cst_1 : f32 to vector<8x1xf32>
    %5 = arith.addf %3, %4 : vector<8x1xf32>
    %6 = math.rsqrt %5 : vector<8x1xf32>
    %7 = vector.broadcast %6 : vector<8x1xf32> to vector<8x128xf32>
    %8 = arith.mulf %0, %7 : vector<8x128xf32>
    %c0_2 = arith.constant 0 : index
    %c0_3 = arith.constant 0 : index
    %9 = vector.load %arg3[%c0_2, %c0_3] : memref<128x128xf32, #tpu.memory_space<vmem>>, vector<128x128xf32>
    %cst_4 = arith.constant dense<0.000000e+00> : vector<8x128xf32>
    %10 = tpu.matmul %8, %9, %cst_4 {dimension_numbers = #tpu.dot_dimension_numbers<[1], [0], [0], [1], [0, 0, 1, 1], [], []>} : vector<8x128xf32>, vector<128x128xf32>, vector<8x128xf32> -> vector<8x128xf32>
    %cst_5 = arith.constant 1.000000e+00 : f32
    %11 = vector.broadcast %cst_5 : f32 to vector<8x128xf32>
    %12 = arith.subf %11, %10 : vector<8x128xf32>
    %cst_6 = arith.constant 0.000000e+00 : f32
    %13 = vector.broadcast %cst_6 : f32 to vector<8x128xf32>
    %14 = arith.maximumf %12, %13 : vector<8x128xf32>
    %15 = math.sqrt %14 : vector<8x128xf32>
    %16 = tpu.iota {dimensions = array<i32: 1>} : vector<8x128xi32>
    %c10_i32 = arith.constant 10 : i32
    %17 = vector.broadcast %c10_i32 : i32 to vector<8x128xi32>
    %18 = arith.cmpi slt, %16, %17 : vector<8x128xi32>
    %cst_7 = arith.constant 0.000000e+00 : f32
    %19 = vector.broadcast %cst_7 : f32 to vector<8x128xf32>
    %20 = arith.select %18, %15, %19 : vector<8x128xi1>, vector<8x128xf32>
    %cst_8 = arith.constant dense<0.000000e+00> : vector<8xf32>
    %21 = vector.multi_reduction <add>, %20, %cst_8 [1] : vector<8x128xf32> to vector<8xf32>
    %22 = vector.shape_cast %21 : vector<8xf32> to vector<8x1xf32>
    %cst_9 = arith.constant 1.000000e-01 : f32
    %23 = vector.broadcast %cst_9 : f32 to vector<8x1xf32>
    %24 = arith.mulf %22, %23 : vector<8x1xf32>
    %c0_10 = arith.constant 0 : index
    %25 = memref.load %arg1[%c0_10] : memref<1xf32, #tpu.memory_space<smem>>
    %26 = vector.broadcast %24 : vector<8x1xf32> to vector<8x128xf32>
    %27 = arith.addf %15, %26 : vector<8x128xf32>
    %28 = vector.broadcast %25 : f32 to vector<8x128xf32>
    %29 = arith.mulf %28, %27 : vector<8x128xf32>
    %c0_11 = arith.constant 0 : index
    %c0_12 = arith.constant 0 : index
    %30 = vector.load %arg4[%c0_11, %c0_12] : memref<8x128xf32, #tpu.memory_space<vmem>>, vector<8x128xf32>
    tpu.vector_store %arg4[%c0_11, %c0_12], %29 {strides = array<i32>} : memref<8x128xf32, #tpu.memory_space<vmem>>, vector<8x128xf32>,
    return
  }
  func.func @transform_0(%arg0: i32) -> i32 {
    %c0_i32 = arith.constant 0 : i32
    %c0_i32_0 = arith.constant 0 : i32
    return %c0_i32 : i32
  }
  func.func @transform_1(%arg0: i32) -> (i32, i32) {
    %c0_i32 = arith.constant 0 : i32
    %c0_i32_0 = arith.constant 0 : i32
    return %arg0, %c0_i32 : i32, i32
  }
  func.func @transform_2(%arg0: i32) -> (i32, i32) {
    %c0_i32 = arith.constant 0 : i32
    %c0_i32_0 = arith.constant 0 : i32
    %c0_i32_1 = arith.constant 0 : i32
    return %c0_i32, %c0_i32_0 : i32, i32
  }
  func.func @transform_3(%arg0: i32) -> (i32, i32) {
    %c0_i32 = arith.constant 0 : i32
    %c0_i32_0 = arith.constant 0 : i32
    return %arg0, %c0_i32 : i32, i32
  }
}

</mosaic_0001>

<bundles_post_ra>
// kernel: tpu_custom_call.1
= control target key start
LH: loop header
LB: loop body
LE: loop exit
PB: predicated region body
PF: predicated region fallthrough
CT: control target
= control target key end

     0   :  { %9 = vsyncpa [#allocation4], 0  ;;  %s406_s0 = inlined_call_operand.<no memory space> [shape: f32[1], index: 0, kind: input, shape index: {}]   ;;  %s407_s1 = inlined_call_operand.hbm [shape: f32[8,128], index: 1, kind: input, shape index: {}]   ;;  %s408_s2 = inlined_call_operand.hbm [shape: f32[128,128], index: 2, kind: input, shape index: {}]   ;;  %s409_s3 = inlined_call_operand.hbm [shape: f32[8,128], index: 3, kind: output, shape index: {}]  }
   0x1   :  { %10 = vsyncpa [#allocation7], 0 }
   0x2   :  { %11 = vsyncpa [#allocation5], 0  ;;  %s332_s12 = smov [#allocation3]   ;;  %s333_s14 = smov [#allocation6]  }
   0x3   :  { %s20_s13 = sshll.u32 %s332_s12, 4  ;;  %s29_s15 = sshll.u32 %s333_s14, 4  ;;  %s21_s13 = int_to_ptr.vmem [resolvable:$true] %s20_s13  ;;  %s360_s15 = int_to_ptr.vmem [resolvable:$true] %s29_s15 }
   0x4   :  { %s260_s18 = scalar_lea.hbm %s407_s1, 128 }
   0x5   :  { %p261_p0 = scmp.ne.s32.totalorder %s407_s1, %s260_s18  ;;  %p264_p1 = scmp.lt.u32.totalorder %s260_s18, %s407_s1 }
   0x7   :  { %p266_p2 = pnand %p264_p1, %p261_p0 }
   0x9   :  { %269 = shalt.err (!%p266_p2)
}
   0xa   :  { %s270_s23 = scalar_lea.vmem %s21_s13, 128  ;;  %p275_p4 = scmp.lt.s32.totalorder %s21_s13, %s21_s13 }
   0xb   :  { %p271_p3 = scmp.ne.s32.totalorder %s21_s13, %s270_s23  ;;  %p276_p5 = scmp.lt.s32.totalorder %s270_s23, %s270_s23 }
   0xd   :  { %p277_p6 = por %p276_p5, %p275_p4 }
   0xf   :  { %p278_p7 = pnand %p277_p6, %p271_p3 }
  0x11   :  { %281 = shalt.err (!%p278_p7)
}
  0x12   :  { %23 = dma.hbm_to_vmem [thread:$0]  %s407_s1, 128, %s21_s13, [#allocation4]  }
  0x13   :  { %s282_s28 = scalar_lea.hbm %s408_s2, 2048 }
  0x14   :  { %p283_p8 = scmp.ne.s32.totalorder %s408_s2, %s282_s28  ;;  %p286_p9 = scmp.lt.u32.totalorder %s282_s28, %s408_s2 }
  0x16   :  { %p288_p10 = pnand %p286_p9, %p283_p8 }
  0x18   :  { %291 = shalt.err (!%p288_p10)
}
  0x19   :  { %s292_s6 = scalar_lea.vmem %s360_s15, 2048  ;;  %p297_p12 = scmp.lt.s32.totalorder %s360_s15, %s360_s15 }
  0x1a   :  { %p293_p11 = scmp.ne.s32.totalorder %s360_s15, %s292_s6  ;;  %p298_p13 = scmp.lt.s32.totalorder %s292_s6, %s292_s6 }
  0x1c   :  { %p299_p0 = por %p298_p13, %p297_p12 }
  0x1e   :  { %p300_p1 = pnand %p299_p0, %p293_p11 }
  0x20   :  { %303 = shalt.err (!%p300_p1)
}
  0x21   :  { %s334_s1 = smov 128   ;;  %s335_s7 = smov 8  }
  0x22   :  { %35 = dma.hbm_to_vmem [thread:$0]  %s408_s2, 2048, %s360_s15, [#allocation7], %s334_s1, %s334_s1, %s335_s7  }
  0x23   :  { %326 = dma.done.wait [#allocation4], 128  }
  0x24   :  { %327 = vsyncadd [#allocation4], 4294967168 }
  0x25   :  { %328 = dma.done.wait [#allocation7], 2048  }
  0x26   :  { %329 = vsyncadd [#allocation7], 4294965248  ;;  %v336_v0 = vmov 0.0|0.0   ;;  %v42_v1 = vld [vmem:[#allocation3] sm:$0xff]  ;;  %v49_v2 = vld [vmem:[#allocation6] sm:$0xff]  ;;  %vm337_vm0 = vmmov 0   ;;  %v144_v36 = vlaneseq  ;;  %v153_v46 = vstv %s406_s0 }
  0x27   :  { %224 = vmatprep.subr.bf16.mxu0 %v336_v0  ;;  %v50_v3 = vld [vmem:[#allocation6 + $0x8] sm:$0xff]  ;;  %v43_v4 = vmul.f32 %v42_v1, %v42_v1  ;;  %v51_v6 = vld [vmem:[#allocation6 + $0x10] sm:$0xff]  ;;  %v52_v7 = vld [vmem:[#allocation6 + $0x18] sm:$0xff]  ;;  %v338_v23 = vmov 0.0   ;;  %s339_s11 = smov [#allocation8]  }
  0x28   :  { %v225_v5 = vpack.c.bf16 %v50_v3, %v49_v2  ;;  %v228_v8 = vpack.c.bf16 %v52_v7, %v51_v6  ;;  %v53_v9 = vld [vmem:[#allocation6 + $0x20] sm:$0xff]  ;;  %v54_v10 = vld [vmem:[#allocation6 + $0x28] sm:$0xff]  ;;  %v55_v12 = vld [vmem:[#allocation6 + $0x30] sm:$0xff]  ;;  %221 = vmatprep.mubr.msk.f32.mxu0 %vm337_vm0, %v338_v23  ;;  %v145_v37 = vand.u32 127, %v144_v36  ;;  %s162_s12 = sshll.u32 %s339_s11, 4  ;;  %s163_s12 = int_to_ptr.vmem [resolvable:$true] %s162_s12 }
  0x29   :  { %44 = vadd.xlane.f32.xlu0 %v43_v4  ;;  %v231_v11 = vpack.c.bf16 %v54_v10, %v53_v9  ;;  %v56_v13 = vld [vmem:[#allocation6 + $0x38] sm:$0xff]  ;;  %v57_v15 = vld [vmem:[#allocation6 + $0x40] sm:$0xff]  ;;  %v58_v16 = vld [vmem:[#allocation6 + $0x48] sm:$0xff]  ;;  %s304_s13 = scalar_lea.vmem %s163_s12, 128  ;;  %p309_p3 = scmp.lt.s32.totalorder %s163_s12, %s163_s12 }
  0x2a   :  { %226 = vmatpush3.bf16.msra.mxu0 %v225_v5  ;;  %v234_v14 = vpack.c.bf16 %v56_v13, %v55_v12  ;;  %v237_v17 = vpack.c.bf16 %v58_v16, %v57_v15  ;;  %v59_v18 = vld [vmem:[#allocation6 + $0x50] sm:$0xff]  ;;  %v60_v19 = vld [vmem:[#allocation6 + $0x58] sm:$0xff]  ;;  %v61_v21 = vld [vmem:[#allocation6 + $0x60] sm:$0xff]  ;;  %vm146_vm2 = vcmp.lt.s32.totalorder %v145_v37, 10  ;;  %p305_p2 = scmp.ne.s32.totalorder %s163_s12, %s304_s13  ;;  %p310_p4 = scmp.lt.s32.totalorder %s304_s13, %s304_s13 }
  0x2b   :  { %227 = vmatprep.subr.bf16.mxu0 %v336_v0  ;;  %v240_v20 = vpack.c.bf16 %v60_v19, %v59_v18  ;;  %v62_v22 = vld [vmem:[#allocation6 + $0x68] sm:$0xff]  ;;  %v63_v25 = vld [vmem:[#allocation6 + $0x70] sm:$0xff]  ;;  %v64_v26 = vld [vmem:[#allocation6 + $0x78] sm:$0xff] }
  0x2c   :  { %v243_v24 = vpack.c.bf16 %v62_v22, %v61_v21  ;;  %v246_v27 = vpack.c.bf16 %v64_v26, %v63_v25  ;;  %p311_p5 = por %p310_p4, %p309_p3 }
  0x2e   :  { %229 = vmatpush3.bf16.msra.mxu0 %v228_v8  ;;  %p312_p6 = pnand %p311_p5, %p305_p2 }
  0x2f   :  { %230 = vmatprep.subr.bf16.mxu0 %v336_v0 }
  0x32   :  { %232 = vmatpush3.bf16.msra.mxu0 %v231_v11 }
  0x33   :  { %233 = vmatprep.subr.bf16.mxu0 %v336_v0 }
  0x36   :  { %235 = vmatpush3.bf16.msra.mxu0 %v234_v14 }
  0x37   :  { %236 = vmatprep.subr.bf16.mxu0 %v336_v0 }
  0x3a   :  { %238 = vmatpush3.bf16.msra.mxu0 %v237_v17 }
  0x3b   :  { %239 = vmatprep.subr.bf16.mxu0 %v336_v0 }
  0x3e   :  { %241 = vmatpush3.bf16.msra.mxu0 %v240_v20 }
  0x3f   :  { %242 = vmatprep.subr.bf16.mxu0 %v336_v0 }
  0x42   :  { %244 = vmatpush3.bf16.msra.mxu0 %v243_v24 }
  0x43   :  { %245 = vmatprep.subr.bf16.mxu0 %v336_v0 }
  0x46   :  { %247 = vmatpush3.bf16.msra.mxu0 %v246_v27 }
  0xb6   :  { %v45_v28 = vpop.xlane.xlu0 %44 }
  0xb7   :  { %v46_v29 = vadd.f32 1e-24, %v45_v28 }
  0xb9   :  { %256 = vrsqrt.f32 %v46_v29 }
  0xc3   :  { %v257_v30 = vpop.eup %256 }
  0xc4   :  { %v48_v31 = vmul.f32 %v257_v30, %v42_v1 }
  0xc6   :  { %222 = vmatmul.mubr.f32.vlgmr.msra.gmra.mrb[0].mxu0 %v48_v31 }
 0x199   :  { %v131_v32 = vpop.f32.mrb[0].mxu0 }
 0x19a   :  { %v135_v33 = vsub.f32 1.0, %v131_v32  ;;  %v223_v34 = vpop.f32.mrb[1].mxu0 }
 0x19c   :  { %v136_v35 = vmax.f32 %v135_v33, 0.0 }
 0x19e   :  { %258 = vrsqrt.f32 %v136_v35  ;;  %vm139_vm1 = vcmp.eq.f32.partialorder %v136_v35, inf  ;;  %v142_v40 = vand.u32 2147483648, %v136_v35  ;;  %vm141_vm3 = vcmp.eq.f32.partialorder %v136_v35, 0.0 }
 0x1a8   :  { %v259_v38 = vpop.eup %258 }
 0x1a9   :  { %v138_v39 = vmul.f32 %v259_v38, %v136_v35 }
 0x1ab   :  { %v140_v41 = vsel %vm139_vm1, %v136_v35, %v138_v39 }
 0x1ac   :  { %v143_v42 = vsel %vm141_vm3, %v142_v40, %v140_v41 }
 0x1ad   :  { %v147_v43 = vsel %vm146_vm2, %v143_v42, 0.0 }
 0x1ae   :  { %148 = vadd.xlane.f32.xlu0 %v147_v43 }
 0x23b   :  { %v149_v44 = vpop.xlane.xlu0 %148 }
 0x23c   :  { %v150_v45 = vmul.f32 0.1, %v149_v44 }
 0x23e   :  { %v152_v47 = vadd.f32 %v150_v45, %v143_v42 }
 0x240   :  { %v154_v48 = vmul.f32 %v153_v46, %v152_v47 }
 0x242   :  { %155 = vst [vmem:[#allocation8] sm:$0xff] %v154_v48 }
 0x243   :  { %315 = shalt.err (!%p312_p6)
}
 0x244   :  { %s316_s16 = scalar_lea.hbm %s409_s3, 128 }
 0x245   :  { %p317_p7 = scmp.ne.s32.totalorder %s409_s3, %s316_s16  ;;  %p320_p8 = scmp.lt.u32.totalorder %s316_s16, %s409_s3 }
 0x247   :  { %p322_p9 = pnand %p320_p8, %p317_p7 }
 0x249   :  { %325 = shalt.err (!%p322_p9)
}
 0x24a   :  { %165 = dma.vmem_to_hbm [thread:$0]  %s163_s12, 128, %s409_s3, [#allocation5]  }
 0x24b   :  { %330 = dma.done.wait [#allocation5], 128  }
 0x24c   :  { %331 = vsyncadd [#allocation5], 4294967168 }
 0x24d   :  { %169 = vsyncpa [#allocation4], 1 }
 0x24e   :  { %170 = vsyncpa [#allocation7], 1 }
 0x24f   :  { %171 = vsyncpa [#allocation5], 1 }

</bundles_post_ra>
